<compile_context>
chip_gen: v7x
topology: tpu7x:2x2x1
jax: 0.10.0
libtpu: 0.0.40
codegen_flags: <defaults>
</compile_context>

<pallas_src>
import jax
import jax.numpy as jnp
from jax.experimental import pallas as pl
from jax.experimental.pallas import tpu as pltpu


# ---------------------------------------------------------------------------
# Fused CBAM kernel (one batch element per grid step)
# ---------------------------------------------------------------------------
def _cbam_kernel(x_ref, w1_ref, b1_ref, w2t_ref, b2_ref, hb_ref,
                 out_ref, acc_ref):
    # x_ref:   (1, C, H, W)
    # w1_ref:  (C, 1, Cr)   Linear1 weight, per-channel layout
    # b1_ref:  (1, Cr)
    # w2t_ref: (C, 1, Cr)   Linear2 weight transposed, per-channel layout
    # b2_ref:  (C, 1, 1)
    # hb_ref:  (2, 7, W, W) horizontal band matrices (conv weights folded in)
    # out_ref: (1, C, H, W)
    # acc_ref: (H + 6, W) f32 scratch (vertical-shift accumulator)
    C = x_ref.shape[1]
    H = x_ref.shape[2]
    W = x_ref.shape[3]

    x = x_ref[0].astype(jnp.float32)                          # (C, H, W)

    # ---- channel attention (CAM) ------------------------------------------
    # adaptive max / avg pool over spatial dims -> (C, 1, 1)
    mx = jnp.max(jnp.max(x, axis=2, keepdims=True), axis=1, keepdims=True)
    av = (jnp.sum(jnp.sum(x, axis=2, keepdims=True), axis=1, keepdims=True)
          * (1.0 / (H * W)))

    w1 = w1_ref[...]                                          # (C, 1, Cr)
    b1 = b1_ref[...]                                          # (1, Cr)
    # hidden = relu(W1^T p + b1); contraction over C as a leading-axis sum.
    hm = jnp.maximum(jnp.sum(w1 * mx, axis=0) + b1, 0.0)      # (1, Cr)
    ha = jnp.maximum(jnp.sum(w1 * av, axis=0) + b1, 0.0)      # (1, Cr)
    hsum = (hm + ha)[None]                                    # (1, 1, Cr)

    # logits_c = sum_k W2[k, c] * hsum[k] + 2 * b2[c]  (mlp(max) + mlp(avg))
    logits = (jnp.sum(w2t_ref[...] * hsum, axis=2, keepdims=True)
              + 2.0 * b2_ref[...])                            # (C, 1, 1)
    att = jax.nn.sigmoid(logits)                              # (C, 1, 1)

    # channel-attended activations (kept in registers / VMEM only)
    y = x * att                                               # (C, H, W)

    # ---- spatial attention (SAM) -------------------------------------------
    chmax = jnp.max(y, axis=0)                                # (H, W)
    chavg = jnp.sum(y, axis=0) * (1.0 / C)                    # (H, W)

    # 7x7 conv (2 in-ch, 1 out-ch, pad=3, no bias):
    #   horizontal taps: 2 MXU matmuls per kernel row with the conv weights
    #   folded into (W, W) band matrices;
    #   vertical taps: static-offset accumulation into an (H+6, W) scratch
    #   (no shift matmuls, no (7, H, H) constant).
    acc_ref[...] = jnp.zeros((H + 6, W), jnp.float32)
    for ki in range(7):
        inner = (jnp.dot(chmax, hb_ref[0, ki],
                         preferred_element_type=jnp.float32)
                 + jnp.dot(chavg, hb_ref[1, ki],
                           preferred_element_type=jnp.float32))   # (H, W)
        off = 6 - ki
        acc_ref[off:off + H, :] += inner
    satt = jax.nn.sigmoid(acc_ref[3:3 + H, :])                # (H, W)

    # ---- scale + residual (whole-tile, vectorized; no per-channel loop) ----
    # out = satt * (att * x) + x = x * (att * satt + 1)
    out_ref[0] = (x * (att * satt[None] + 1.0)).astype(out_ref.dtype)


# ---------------------------------------------------------------------------
# Wrapper
# ---------------------------------------------------------------------------
def _horizontal_band_matrices(wconv, W):
    """Fold the 7x7 conv weights (2 in-ch, 1 out-ch, pad=3) into per-kernel-row
    horizontal band matrices M of shape (2, 7, W, W) such that
    (P @ M[c, ki])[h, w] = sum_kj P[h, w+kj-3] * wconv[0, c, ki, kj]
    with zero padding handled by the band structure."""
    wt = wconv[0].astype(jnp.float32)                         # (2, 7, 7)
    j = jnp.arange(W)[:, None]
    w = jnp.arange(W)[None, :]
    d = j - w + 3                                             # (W, W)
    band = jnp.where((d >= 0) & (d <= 6), wt[:, :, jnp.clip(d, 0, 6)], 0.0)
    return band                                               # (2, 7, W, W)


def cbam_forward(x, params):
    B, C, H, W = x.shape
    Cr = params["w1"].shape[1]

    # Tiny, trace-time weight re-layouts (constant-foldable, done once).
    w1_3d = params["w1"].astype(jnp.float32).reshape(C, 1, Cr)
    w2t_3d = params["w2"].astype(jnp.float32).T.reshape(C, 1, Cr)
    b1_row = params["b1"].astype(jnp.float32).reshape(1, Cr)
    b2_3d = params["b2"].astype(jnp.float32).reshape(C, 1, 1)
    hband = _horizontal_band_matrices(params["wconv"], W)

    # Re-derive the VMEM budget from the actual per-step working set
    # (double-buffered x + out blocks, resident weights, conv scratch) so the
    # same code stays within v7x's 64 MiB while using headroom on v5e/v6e.
    def _rup(v, m):
        return (v + m - 1) // m * m

    plane = _rup(H, 8) * _rup(W, 128) * 4
    xblk = C * plane
    wbytes = (2 * C * 8 * _rup(Cr, 128)          # w1_3d + w2t_3d
              + 8 * _rup(Cr, 128)                # b1
              + C * 8 * 128                      # b2
              + 2 * 7 * _rup(W, 8) * _rup(W, 128)) * 4   # hband
    scratch = _rup(H + 6, 8) * _rup(W, 128) * 4
    est = 2 * (2 * xblk) + wbytes + scratch
    vmem_limit = int(min(max(2 * est, 16 * 1024 * 1024), 64 * 1024 * 1024))

    return pl.pallas_call(
        _cbam_kernel,
        grid=(B,),
        out_shape=jax.ShapeDtypeStruct((B, C, H, W), x.dtype),
        in_specs=[
            pl.BlockSpec((1, C, H, W), lambda b: (b, 0, 0, 0)),   # x
            pl.BlockSpec((C, 1, Cr), lambda b: (0, 0, 0)),        # w1
            pl.BlockSpec((1, Cr), lambda b: (0, 0)),              # b1
            pl.BlockSpec((C, 1, Cr), lambda b: (0, 0, 0)),        # w2^T
            pl.BlockSpec((C, 1, 1), lambda b: (0, 0, 0)),         # b2
            pl.BlockSpec((2, 7, W, W), lambda b: (0, 0, 0, 0)),   # hband
        ],
        out_specs=pl.BlockSpec((1, C, H, W), lambda b: (b, 0, 0, 0)),
        scratch_shapes=[pltpu.VMEM((H + 6, W), jnp.float32)],
        compiler_params=pltpu.CompilerParams(
            dimension_semantics=("parallel",),
            vmem_limit_bytes=vmem_limit,
        ),
    )(x, w1_3d, b1_row, w2t_3d, b2_3d, hband)


# ---------------------------------------------------------------------------
# Pure-JAX reference (correctness sanity check)
# ---------------------------------------------------------------------------
def cbam_reference(x, params):
    mx = jnp.max(x, axis=(2, 3))
    av = jnp.mean(x, axis=(2, 3))

    def mlp(v):
        h = jnp.maximum(v @ params["w1"] + params["b1"], 0.0)
        return h @ params["w2"] + params["b2"]

    att = jax.nn.sigmoid(mlp(mx) + mlp(av))[:, :, None, None]
    y = x * att

    chmax = jnp.max(y, axis=1, keepdims=True)
    chavg = jnp.mean(y, axis=1, keepdims=True)
    concat = jnp.concatenate([chmax, chavg], axis=1)
    conv = jax.lax.conv_general_dilated(
        concat, params["wconv"], window_strides=(1, 1),
        padding=[(3, 3), (3, 3)],
        dimension_numbers=("NCHW", "OIHW", "NCHW"))
    satt = jax.nn.sigmoid(conv)
    return satt * y + x


if __name__ == "__main__":
    B, C, H, W = 2, 4, 16, 16
    r = 2
    Cr = C // r

    key = jax.random.PRNGKey(0)
    kx, k1, k2, k3, k4, k5 = jax.random.split(key, 6)

    x = jax.random.normal(kx, (B, C, H, W), dtype=jnp.float32)

    params = {
        "w1": jax.random.normal(k1, (C, Cr), dtype=jnp.float32) * 0.2,
        "b1": jax.random.normal(k2, (Cr,), dtype=jnp.float32) * 0.1,
        "w2": jax.random.normal(k3, (Cr, C), dtype=jnp.float32) * 0.2,
        "b2": jax.random.normal(k4, (C,), dtype=jnp.float32) * 0.1,
        "wconv": jax.random.normal(k5, (1, 2, 7, 7), dtype=jnp.float32) * 0.1,
    }

    out = jax.block_until_ready(cbam_forward(x, params))
    ref = cbam_reference(x, params)

    assert out.shape == (B, C, H, W)
    assert jnp.allclose(out, ref, atol=1e-4, rtol=1e-4), "mismatch vs reference"

    print("KERNEL_OK")
</pallas_src>

<mosaic_0001>
module attributes {stable_mosaic.version = 11 : i64} {
  func.func @_cbam_kernel(%arg0: i32, %arg1: memref<1x4x16x16xf32, #tpu.memory_space<vmem>>, %arg2: memref<4x1x2xf32, #tpu.memory_space<vmem>>, %arg3: memref<1x2xf32, #tpu.memory_space<vmem>>, %arg4: memref<4x1x2xf32, #tpu.memory_space<vmem>>, %arg5: memref<4x1x1xf32, #tpu.memory_space<vmem>>, %arg6: memref<2x7x16x16xf32, #tpu.memory_space<vmem>>, %arg7: memref<1x4x16x16xf32, #tpu.memory_space<vmem>>, %arg8: memref<22x16xf32, #tpu.memory_space<vmem>>) attributes {dimension_semantics = [#tpu.dimension_semantics<parallel>], iteration_bounds = array<i64: 2>, scalar_prefetch = 0 : i64, scratch_operands = 1 : i64, tpu.core_type = #tpu.core_type<tc>, window_params = [{transform_indices = @transform_0, window_bounds = array<i64: 1, 4, 16, 16>}, {pipeline_mode = #tpu.pipeline_mode<synchronous>, transform_indices = @transform_1, window_bounds = array<i64: 4, 1, 2>}, {pipeline_mode = #tpu.pipeline_mode<synchronous>, transform_indices = @transform_2, window_bounds = array<i64: 1, 2>}, {pipeline_mode = #tpu.pipeline_mode<synchronous>, transform_indices = @transform_3, window_bounds = array<i64: 4, 1, 2>}, {pipeline_mode = #tpu.pipeline_mode<synchronous>, transform_indices = @transform_4, window_bounds = array<i64: 4, 1, 1>}, {pipeline_mode = #tpu.pipeline_mode<synchronous>, transform_indices = @transform_5, window_bounds = array<i64: 2, 7, 16, 16>}, {transform_indices = @transform_6, window_bounds = array<i64: 1, 4, 16, 16>}]} {
    %c0 = arith.constant 0 : index
    %c0_0 = arith.constant 0 : index
    %c0_1 = arith.constant 0 : index
    %c0_2 = arith.constant 0 : index
    %0 = vector.load %arg1[%c0, %c0_0, %c0_1, %c0_2] : memref<1x4x16x16xf32, #tpu.memory_space<vmem>>, vector<1x4x16x16xf32>
    %1 = vector.shape_cast %0 : vector<1x4x16x16xf32> to vector<4x16x16xf32>
    %cst = arith.constant dense<0xFF800000> : vector<4x16xf32>
    %2 = vector.multi_reduction <maximumf>, %1, %cst [2] : vector<4x16x16xf32> to vector<4x16xf32>
    %3 = vector.shape_cast %2 : vector<4x16xf32> to vector<4x16x1xf32>
    %cst_3 = arith.constant dense<0xFF800000> : vector<4x1xf32>
    %4 = vector.multi_reduction <maximumf>, %3, %cst_3 [1] : vector<4x16x1xf32> to vector<4x1xf32>
    %5 = vector.shape_cast %4 : vector<4x1xf32> to vector<4x1x1xf32>
    %cst_4 = arith.constant dense<0.000000e+00> : vector<4x16xf32>
    %6 = vector.multi_reduction <add>, %1, %cst_4 [2] : vector<4x16x16xf32> to vector<4x16xf32>
    %7 = vector.shape_cast %6 : vector<4x16xf32> to vector<4x16x1xf32>
    %cst_5 = arith.constant dense<0.000000e+00> : vector<4x1xf32>
    %8 = vector.multi_reduction <add>, %7, %cst_5 [1] : vector<4x16x1xf32> to vector<4x1xf32>
    %9 = vector.shape_cast %8 : vector<4x1xf32> to vector<4x1x1xf32>
    %cst_6 = arith.constant 3.906250e-03 : f32
    %10 = vector.broadcast %cst_6 : f32 to vector<4x1x1xf32>
    %11 = arith.mulf %9, %10 : vector<4x1x1xf32>
    %c0_7 = arith.constant 0 : index
    %c0_8 = arith.constant 0 : index
    %c0_9 = arith.constant 0 : index
    %12 = vector.load %arg2[%c0_7, %c0_8, %c0_9] : memref<4x1x2xf32, #tpu.memory_space<vmem>>, vector<4x1x2xf32>
    %c0_10 = arith.constant 0 : index
    %c0_11 = arith.constant 0 : index
    %13 = vector.load %arg3[%c0_10, %c0_11] : memref<1x2xf32, #tpu.memory_space<vmem>>, vector<1x2xf32>
    %14 = vector.broadcast %5 : vector<4x1x1xf32> to vector<4x1x2xf32>
    %15 = arith.mulf %12, %14 : vector<4x1x2xf32>
    %cst_12 = arith.constant dense<0.000000e+00> : vector<1x2xf32>
    %16 = vector.multi_reduction <add>, %15, %cst_12 [0] : vector<4x1x2xf32> to vector<1x2xf32>
    %17 = arith.addf %16, %13 : vector<1x2xf32>
    %cst_13 = arith.constant 0.000000e+00 : f32
    %18 = vector.broadcast %cst_13 : f32 to vector<1x2xf32>
    %19 = arith.maximumf %17, %18 : vector<1x2xf32>
    %20 = vector.broadcast %11 : vector<4x1x1xf32> to vector<4x1x2xf32>
    %21 = arith.mulf %12, %20 : vector<4x1x2xf32>
    %cst_14 = arith.constant dense<0.000000e+00> : vector<1x2xf32>
    %22 = vector.multi_reduction <add>, %21, %cst_14 [0] : vector<4x1x2xf32> to vector<1x2xf32>
    %23 = arith.addf %22, %13 : vector<1x2xf32>
    %cst_15 = arith.constant 0.000000e+00 : f32
    %24 = vector.broadcast %cst_15 : f32 to vector<1x2xf32>
    %25 = arith.maximumf %23, %24 : vector<1x2xf32>
    %26 = arith.addf %19, %25 : vector<1x2xf32>
    %27 = vector.shape_cast %26 : vector<1x2xf32> to vector<1x1x2xf32>
    %c0_16 = arith.constant 0 : index
    %c0_17 = arith.constant 0 : index
    %c0_18 = arith.constant 0 : index
    %28 = vector.load %arg4[%c0_16, %c0_17, %c0_18] : memref<4x1x2xf32, #tpu.memory_space<vmem>>, vector<4x1x2xf32>
    %29 = vector.broadcast %27 : vector<1x1x2xf32> to vector<4x1x2xf32>
    %30 = arith.mulf %28, %29 : vector<4x1x2xf32>
    %cst_19 = arith.constant dense<0.000000e+00> : vector<4x1xf32>
    %31 = vector.multi_reduction <add>, %30, %cst_19 [2] : vector<4x1x2xf32> to vector<4x1xf32>
    %32 = vector.shape_cast %31 : vector<4x1xf32> to vector<4x1x1xf32>
    %c0_20 = arith.constant 0 : index
    %c0_21 = arith.constant 0 : index
    %c0_22 = arith.constant 0 : index
    %33 = vector.load %arg5[%c0_20, %c0_21, %c0_22] : memref<4x1x1xf32, #tpu.memory_space<vmem>>, vector<4x1x1xf32>
    %cst_23 = arith.constant 2.000000e+00 : f32
    %34 = vector.broadcast %cst_23 : f32 to vector<4x1x1xf32>
    %35 = arith.mulf %34, %33 : vector<4x1x1xf32>
    %36 = arith.addf %32, %35 : vector<4x1x1xf32>
    %37 = arith.negf %36 : vector<4x1x1xf32>
    %38 = math.exp %37 : vector<4x1x1xf32>
    %cst_24 = arith.constant 1.000000e+00 : f32
    %39 = vector.broadcast %cst_24 : f32 to vector<4x1x1xf32>
    %40 = arith.addf %39, %38 : vector<4x1x1xf32>
    %41 = arith.divf %39, %40 : vector<4x1x1xf32>
    %42 = vector.broadcast %41 : vector<4x1x1xf32> to vector<4x16x16xf32>
    %43 = arith.mulf %1, %42 : vector<4x16x16xf32>
    %cst_25 = arith.constant dense<0xFF800000> : vector<16x16xf32>
    %44 = vector.multi_reduction <maximumf>, %43, %cst_25 [0] : vector<4x16x16xf32> to vector<16x16xf32>
    %cst_26 = arith.constant dense<0.000000e+00> : vector<16x16xf32>
    %45 = vector.multi_reduction <add>, %43, %cst_26 [0] : vector<4x16x16xf32> to vector<16x16xf32>
    %cst_27 = arith.constant 2.500000e-01 : f32
    %46 = vector.broadcast %cst_27 : f32 to vector<16x16xf32>
    %47 = arith.mulf %45, %46 : vector<16x16xf32>
    %cst_28 = arith.constant 0.000000e+00 : f32
    %48 = vector.broadcast %cst_28 : f32 to vector<22x16xf32>
    %c0_29 = arith.constant 0 : index
    %c0_30 = arith.constant 0 : index
    %49 = vector.load %arg8[%c0_29, %c0_30] : memref<22x16xf32, #tpu.memory_space<vmem>>, vector<22x16xf32>
    tpu.vector_store %arg8[%c0_29, %c0_30], %48 {strides = array<i32>} : memref<22x16xf32, #tpu.memory_space<vmem>>, vector<22x16xf32>,
    %c0_31 = arith.constant 0 : index
    %c0_32 = arith.constant 0 : index
    %c0_33 = arith.constant 0 : index
    %c0_34 = arith.constant 0 : index
    %50 = vector.load %arg6[%c0_31, %c0_32, %c0_33, %c0_34] : memref<2x7x16x16xf32, #tpu.memory_space<vmem>>, vector<1x1x16x16xf32>
    %51 = vector.shape_cast %50 : vector<1x1x16x16xf32> to vector<16x16xf32>
    %cst_35 = arith.constant dense<0.000000e+00> : vector<16x16xf32>
    %52 = tpu.matmul %44, %51, %cst_35 {dimension_numbers = #tpu.dot_dimension_numbers<[1], [0], [0], [1], [0, 0, 1, 1], [], []>} : vector<16x16xf32>, vector<16x16xf32>, vector<16x16xf32> -> vector<16x16xf32>
    %c1 = arith.constant 1 : index
    %c0_36 = arith.constant 0 : index
    %c0_37 = arith.constant 0 : index
    %c0_38 = arith.constant 0 : index
    %53 = vector.load %arg6[%c1, %c0_36, %c0_37, %c0_38] : memref<2x7x16x16xf32, #tpu.memory_space<vmem>>, vector<1x1x16x16xf32>
    %54 = vector.shape_cast %53 : vector<1x1x16x16xf32> to vector<16x16xf32>
    %cst_39 = arith.constant dense<0.000000e+00> : vector<16x16xf32>
    %55 = tpu.matmul %47, %54, %cst_39 {dimension_numbers = #tpu.dot_dimension_numbers<[1], [0], [0], [1], [0, 0, 1, 1], [], []>} : vector<16x16xf32>, vector<16x16xf32>, vector<16x16xf32> -> vector<16x16xf32>
    %56 = arith.addf %52, %55 : vector<16x16xf32>
    %c6 = arith.constant 6 : index
    %c0_40 = arith.constant 0 : index
    %57 = vector.load %arg8[%c6, %c0_40] : memref<22x16xf32, #tpu.memory_space<vmem>>, vector<16x16xf32>
    %58 = arith.addf %57, %56 : vector<16x16xf32>
    %c6_41 = arith.constant 6 : index
    %c0_42 = arith.constant 0 : index
    %59 = vector.load %arg8[%c6_41, %c0_42] : memref<22x16xf32, #tpu.memory_space<vmem>>, vector<16x16xf32>
    tpu.vector_store %arg8[%c6_41, %c0_42], %58 {strides = array<i32>} : memref<22x16xf32, #tpu.memory_space<vmem>>, vector<16x16xf32>,
    %c0_43 = arith.constant 0 : index
    %c1_44 = arith.constant 1 : index
    %c0_45 = arith.constant 0 : index
    %c0_46 = arith.constant 0 : index
    %60 = vector.load %arg6[%c0_43, %c1_44, %c0_45, %c0_46] : memref<2x7x16x16xf32, #tpu.memory_space<vmem>>, vector<1x1x16x16xf32>
    %61 = vector.shape_cast %60 : vector<1x1x16x16xf32> to vector<16x16xf32>
    %cst_47 = arith.constant dense<0.000000e+00> : vector<16x16xf32>
    %62 = tpu.matmul %44, %61, %cst_47 {dimension_numbers = #tpu.dot_dimension_numbers<[1], [0], [0], [1], [0, 0, 1, 1], [], []>} : vector<16x16xf32>, vector<16x16xf32>, vector<16x16xf32> -> vector<16x16xf32>
    %c1_48 = arith.constant 1 : index
    %c1_49 = arith.constant 1 : index
    %c0_50 = arith.constant 0 : index
    %c0_51 = arith.constant 0 : index
    %63 = vector.load %arg6[%c1_48, %c1_49, %c0_50, %c0_51] : memref<2x7x16x16xf32, #tpu.memory_space<vmem>>, vector<1x1x16x16xf32>
    %64 = vector.shape_cast %63 : vector<1x1x16x16xf32> to vector<16x16xf32>
    %cst_52 = arith.constant dense<0.000000e+00> : vector<16x16xf32>
    %65 = tpu.matmul %47, %64, %cst_52 {dimension_numbers = #tpu.dot_dimension_numbers<[1], [0], [0], [1], [0, 0, 1, 1], [], []>} : vector<16x16xf32>, vector<16x16xf32>, vector<16x16xf32> -> vector<16x16xf32>
    %66 = arith.addf %62, %65 : vector<16x16xf32>
    %c5 = arith.constant 5 : index
    %c0_53 = arith.constant 0 : index
    %67 = vector.load %arg8[%c5, %c0_53] : memref<22x16xf32, #tpu.memory_space<vmem>>, vector<16x16xf32>
    %68 = arith.addf %67, %66 : vector<16x16xf32>
    %c5_54 = arith.constant 5 : index
    %c0_55 = arith.constant 0 : index
    %69 = vector.load %arg8[%c5_54, %c0_55] : memref<22x16xf32, #tpu.memory_space<vmem>>, vector<16x16xf32>
    tpu.vector_store %arg8[%c5_54, %c0_55], %68 {strides = array<i32>} : memref<22x16xf32, #tpu.memory_space<vmem>>, vector<16x16xf32>,
    %c0_56 = arith.constant 0 : index
    %c2 = arith.constant 2 : index
    %c0_57 = arith.constant 0 : index
    %c0_58 = arith.constant 0 : index
    %70 = vector.load %arg6[%c0_56, %c2, %c0_57, %c0_58] : memref<2x7x16x16xf32, #tpu.memory_space<vmem>>, vector<1x1x16x16xf32>
    %71 = vector.shape_cast %70 : vector<1x1x16x16xf32> to vector<16x16xf32>
    %cst_59 = arith.constant dense<0.000000e+00> : vector<16x16xf32>
    %72 = tpu.matmul %44, %71, %cst_59 {dimension_numbers = #tpu.dot_dimension_numbers<[1], [0], [0], [1], [0, 0, 1, 1], [], []>} : vector<16x16xf32>, vector<16x16xf32>, vector<16x16xf32> -> vector<16x16xf32>
    %c1_60 = arith.constant 1 : index
    %c2_61 = arith.constant 2 : index
    %c0_62 = arith.constant 0 : index
    %c0_63 = arith.constant 0 : index
    %73 = vector.load %arg6[%c1_60, %c2_61, %c0_62, %c0_63] : memref<2x7x16x16xf32, #tpu.memory_space<vmem>>, vector<1x1x16x16xf32>
    %74 = vector.shape_cast %73 : vector<1x1x16x16xf32> to vector<16x16xf32>
    %cst_64 = arith.constant dense<0.000000e+00> : vector<16x16xf32>
    %75 = tpu.matmul %47, %74, %cst_64 {dimension_numbers = #tpu.dot_dimension_numbers<[1], [0], [0], [1], [0, 0, 1, 1], [], []>} : vector<16x16xf32>, vector<16x16xf32>, vector<16x16xf32> -> vector<16x16xf32>
    %76 = arith.addf %72, %75 : vector<16x16xf32>
    %c4 = arith.constant 4 : index
    %c0_65 = arith.constant 0 : index
    %77 = vector.load %arg8[%c4, %c0_65] : memref<22x16xf32, #tpu.memory_space<vmem>>, vector<16x16xf32>
    %78 = arith.addf %77, %76 : vector<16x16xf32>
    %c4_66 = arith.constant 4 : index
    %c0_67 = arith.constant 0 : index
    %79 = vector.load %arg8[%c4_66, %c0_67] : memref<22x16xf32, #tpu.memory_space<vmem>>, vector<16x16xf32>
    tpu.vector_store %arg8[%c4_66, %c0_67], %78 {strides = array<i32>} : memref<22x16xf32, #tpu.memory_space<vmem>>, vector<16x16xf32>,
    %c0_68 = arith.constant 0 : index
    %c3 = arith.constant 3 : index
    %c0_69 = arith.constant 0 : index
    %c0_70 = arith.constant 0 : index
    %80 = vector.load %arg6[%c0_68, %c3, %c0_69, %c0_70] : memref<2x7x16x16xf32, #tpu.memory_space<vmem>>, vector<1x1x16x16xf32>
    %81 = vector.shape_cast %80 : vector<1x1x16x16xf32> to vector<16x16xf32>
    %cst_71 = arith.constant dense<0.000000e+00> : vector<16x16xf32>
    %82 = tpu.matmul %44, %81, %cst_71 {dimension_numbers = #tpu.dot_dimension_numbers<[1], [0], [0], [1], [0, 0, 1, 1], [], []>} : vector<16x16xf32>, vector<16x16xf32>, vector<16x16xf32> -> vector<16x16xf32>
    %c1_72 = arith.constant 1 : index
    %c3_73 = arith.constant 3 : index
    %c0_74 = arith.constant 0 : index
    %c0_75 = arith.constant 0 : index
    %83 = vector.load %arg6[%c1_72, %c3_73, %c0_74, %c0_75] : memref<2x7x16x16xf32, #tpu.memory_space<vmem>>, vector<1x1x16x16xf32>
    %84 = vector.shape_cast %83 : vector<1x1x16x16xf32> to vector<16x16xf32>
    %cst_76 = arith.constant dense<0.000000e+00> : vector<16x16xf32>
    %85 = tpu.matmul %47, %84, %cst_76 {dimension_numbers = #tpu.dot_dimension_numbers<[1], [0], [0], [1], [0, 0, 1, 1], [], []>} : vector<16x16xf32>, vector<16x16xf32>, vector<16x16xf32> -> vector<16x16xf32>
    %86 = arith.addf %82, %85 : vector<16x16xf32>
    %c3_77 = arith.constant 3 : index
    %c0_78 = arith.constant 0 : index
    %87 = vector.load %arg8[%c3_77, %c0_78] : memref<22x16xf32, #tpu.memory_space<vmem>>, vector<16x16xf32>
    %88 = arith.addf %87, %86 : vector<16x16xf32>
    %c3_79 = arith.constant 3 : index
    %c0_80 = arith.constant 0 : index
    %89 = vector.load %arg8[%c3_79, %c0_80] : memref<22x16xf32, #tpu.memory_space<vmem>>, vector<16x16xf32>
    tpu.vector_store %arg8[%c3_79, %c0_80], %88 {strides = array<i32>} : memref<22x16xf32, #tpu.memory_space<vmem>>, vector<16x16xf32>,
    %c0_81 = arith.constant 0 : index
    %c4_82 = arith.constant 4 : index
    %c0_83 = arith.constant 0 : index
    %c0_84 = arith.constant 0 : index
    %90 = vector.load %arg6[%c0_81, %c4_82, %c0_83, %c0_84] : memref<2x7x16x16xf32, #tpu.memory_space<vmem>>, vector<1x1x16x16xf32>
    %91 = vector.shape_cast %90 : vector<1x1x16x16xf32> to vector<16x16xf32>
    %cst_85 = arith.constant dense<0.000000e+00> : vector<16x16xf32>
    %92 = tpu.matmul %44, %91, %cst_85 {dimension_numbers = #tpu.dot_dimension_numbers<[1], [0], [0], [1], [0, 0, 1, 1], [], []>} : vector<16x16xf32>, vector<16x16xf32>, vector<16x16xf32> -> vector<16x16xf32>
    %c1_86 = arith.constant 1 : index
    %c4_87 = arith.constant 4 : index
    %c0_88 = arith.constant 0 : index
    %c0_89 = arith.constant 0 : index
    %93 = vector.load %arg6[%c1_86, %c4_87, %c0_88, %c0_89] : memref<2x7x16x16xf32, #tpu.memory_space<vmem>>, vector<1x1x16x16xf32>
    %94 = vector.shape_cast %93 : vector<1x1x16x16xf32> to vector<16x16xf32>
    %cst_90 = arith.constant dense<0.000000e+00> : vector<16x16xf32>
    %95 = tpu.matmul %47, %94, %cst_90 {dimension_numbers = #tpu.dot_dimension_numbers<[1], [0], [0], [1], [0, 0, 1, 1], [], []>} : vector<16x16xf32>, vector<16x16xf32>, vector<16x16xf32> -> vector<16x16xf32>
    %96 = arith.addf %92, %95 : vector<16x16xf32>
    %c2_91 = arith.constant 2 : index
    %c0_92 = arith.constant 0 : index
    %97 = vector.load %arg8[%c2_91, %c0_92] : memref<22x16xf32, #tpu.memory_space<vmem>>, vector<16x16xf32>
    %98 = arith.addf %97, %96 : vector<16x16xf32>
    %c2_93 = arith.constant 2 : index
    %c0_94 = arith.constant 0 : index
    %99 = vector.load %arg8[%c2_93, %c0_94] : memref<22x16xf32, #tpu.memory_space<vmem>>, vector<16x16xf32>
    tpu.vector_store %arg8[%c2_93, %c0_94], %98 {strides = array<i32>} : memref<22x16xf32, #tpu.memory_space<vmem>>, vector<16x16xf32>,
    %c0_95 = arith.constant 0 : index
    %c5_96 = arith.constant 5 : index
    %c0_97 = arith.constant 0 : index
    %c0_98 = arith.constant 0 : index
    %100 = vector.load %arg6[%c0_95, %c5_96, %c0_97, %c0_98] : memref<2x7x16x16xf32, #tpu.memory_space<vmem>>, vector<1x1x16x16xf32>
    %101 = vector.shape_cast %100 : vector<1x1x16x16xf32> to vector<16x16xf32>
    %cst_99 = arith.constant dense<0.000000e+00> : vector<16x16xf32>
    %102 = tpu.matmul %44, %101, %cst_99 {dimension_numbers = #tpu.dot_dimension_numbers<[1], [0], [0], [1], [0, 0, 1, 1], [], []>} : vector<16x16xf32>, vector<16x16xf32>, vector<16x16xf32> -> vector<16x16xf32>
    %c1_100 = arith.constant 1 : index
    %c5_101 = arith.constant 5 : index
    %c0_102 = arith.constant 0 : index
    %c0_103 = arith.constant 0 : index
    %103 = vector.load %arg6[%c1_100, %c5_101, %c0_102, %c0_103] : memref<2x7x16x16xf32, #tpu.memory_space<vmem>>, vector<1x1x16x16xf32>
    %104 = vector.shape_cast %103 : vector<1x1x16x16xf32> to vector<16x16xf32>
    %cst_104 = arith.constant dense<0.000000e+00> : vector<16x16xf32>
    %105 = tpu.matmul %47, %104, %cst_104 {dimension_numbers = #tpu.dot_dimension_numbers<[1], [0], [0], [1], [0, 0, 1, 1], [], []>} : vector<16x16xf32>, vector<16x16xf32>, vector<16x16xf32> -> vector<16x16xf32>
    %106 = arith.addf %102, %105 : vector<16x16xf32>
    %c1_105 = arith.constant 1 : index
    %c0_106 = arith.constant 0 : index
    %107 = vector.load %arg8[%c1_105, %c0_106] : memref<22x16xf32, #tpu.memory_space<vmem>>, vector<16x16xf32>
    %108 = arith.addf %107, %106 : vector<16x16xf32>
    %c1_107 = arith.constant 1 : index
    %c0_108 = arith.constant 0 : index
    %109 = vector.load %arg8[%c1_107, %c0_108] : memref<22x16xf32, #tpu.memory_space<vmem>>, vector<16x16xf32>
    tpu.vector_store %arg8[%c1_107, %c0_108], %108 {strides = array<i32>} : memref<22x16xf32, #tpu.memory_space<vmem>>, vector<16x16xf32>,
    %c0_109 = arith.constant 0 : index
    %c6_110 = arith.constant 6 : index
    %c0_111 = arith.constant 0 : index
    %c0_112 = arith.constant 0 : index
    %110 = vector.load %arg6[%c0_109, %c6_110, %c0_111, %c0_112] : memref<2x7x16x16xf32, #tpu.memory_space<vmem>>, vector<1x1x16x16xf32>
    %111 = vector.shape_cast %110 : vector<1x1x16x16xf32> to vector<16x16xf32>
    %cst_113 = arith.constant dense<0.000000e+00> : vector<16x16xf32>
    %112 = tpu.matmul %44, %111, %cst_113 {dimension_numbers = #tpu.dot_dimension_numbers<[1], [0], [0], [1], [0, 0, 1, 1], [], []>} : vector<16x16xf32>, vector<16x16xf32>, vector<16x16xf32> -> vector<16x16xf32>
    %c1_114 = arith.constant 1 : index
    %c6_115 = arith.constant 6 : index
    %c0_116 = arith.constant 0 : index
    %c0_117 = arith.constant 0 : index
    %113 = vector.load %arg6[%c1_114, %c6_115, %c0_116, %c0_117] : memref<2x7x16x16xf32, #tpu.memory_space<vmem>>, vector<1x1x16x16xf32>
    %114 = vector.shape_cast %113 : vector<1x1x16x16xf32> to vector<16x16xf32>
    %cst_118 = arith.constant dense<0.000000e+00> : vector<16x16xf32>
    %115 = tpu.matmul %47, %114, %cst_118 {dimension_numbers = #tpu.dot_dimension_numbers<[1], [0], [0], [1], [0, 0, 1, 1], [], []>} : vector<16x16xf32>, vector<16x16xf32>, vector<16x16xf32> -> vector<16x16xf32>
    %116 = arith.addf %112, %115 : vector<16x16xf32>
    %c0_119 = arith.constant 0 : index
    %c0_120 = arith.constant 0 : index
    %117 = vector.load %arg8[%c0_119, %c0_120] : memref<22x16xf32, #tpu.memory_space<vmem>>, vector<16x16xf32>
    %118 = arith.addf %117, %116 : vector<16x16xf32>
    %c0_121 = arith.constant 0 : index
    %c0_122 = arith.constant 0 : index
    %119 = vector.load %arg8[%c0_121, %c0_122] : memref<22x16xf32, #tpu.memory_space<vmem>>, vector<16x16xf32>
    tpu.vector_store %arg8[%c0_121, %c0_122], %118 {strides = array<i32>} : memref<22x16xf32, #tpu.memory_space<vmem>>, vector<16x16xf32>,
    %c3_123 = arith.constant 3 : index
    %c0_124 = arith.constant 0 : index
    %120 = vector.load %arg8[%c3_123, %c0_124] : memref<22x16xf32, #tpu.memory_space<vmem>>, vector<16x16xf32>
    %121 = arith.negf %120 : vector<16x16xf32>
    %122 = math.exp %121 : vector<16x16xf32>
    %cst_125 = arith.constant 1.000000e+00 : f32
    %123 = vector.broadcast %cst_125 : f32 to vector<16x16xf32>
    %124 = arith.addf %123, %122 : vector<16x16xf32>
    %125 = arith.divf %123, %124 : vector<16x16xf32>
    %126 = vector.shape_cast %125 : vector<16x16xf32> to vector<1x16x16xf32>
    %127 = vector.broadcast %41 : vector<4x1x1xf32> to vector<4x16x16xf32>
    %128 = vector.broadcast %126 : vector<1x16x16xf32> to vector<4x16x16xf32>
    %129 = arith.mulf %127, %128 : vector<4x16x16xf32>
    %cst_126 = arith.constant 1.000000e+00 : f32
    %130 = vector.broadcast %cst_126 : f32 to vector<4x16x16xf32>
    %131 = arith.addf %129, %130 : vector<4x16x16xf32>
    %132 = arith.mulf %1, %131 : vector<4x16x16xf32>
    %c0_127 = arith.constant 0 : index
    %c0_128 = arith.constant 0 : index
    %c0_129 = arith.constant 0 : index
    %c0_130 = arith.constant 0 : index
    %133 = vector.load %arg7[%c0_127, %c0_128, %c0_129, %c0_130] : memref<1x4x16x16xf32, #tpu.memory_space<vmem>>, vector<1x4x16x16xf32>
    %134 = vector.shape_cast %133 : vector<1x4x16x16xf32> to vector<4x16x16xf32>
    %135 = vector.shape_cast %132 : vector<4x16x16xf32> to vector<1x4x16x16xf32>
    tpu.vector_store %arg7[%c0_127, %c0_128, %c0_129, %c0_130], %135 {strides = array<i32>} : memref<1x4x16x16xf32, #tpu.memory_space<vmem>>, vector<1x4x16x16xf32>,
    return
  }
  func.func @transform_0(%arg0: i32) -> (i32, i32, i32, i32) {
    %c0_i32 = arith.constant 0 : i32
    %c0_i32_0 = arith.constant 0 : i32
    %c0_i32_1 = arith.constant 0 : i32
    %c0_i32_2 = arith.constant 0 : i32
    return %arg0, %c0_i32, %c0_i32_0, %c0_i32_1 : i32, i32, i32, i32
  }
  func.func @transform_1(%arg0: i32) -> (i32, i32, i32) {
    %c0_i32 = arith.constant 0 : i32
    %c0_i32_0 = arith.constant 0 : i32
    %c0_i32_1 = arith.constant 0 : i32
    %c0_i32_2 = arith.constant 0 : i32
    return %c0_i32, %c0_i32_0, %c0_i32_1 : i32, i32, i32
  }
  func.func @transform_2(%arg0: i32) -> (i32, i32) {
    %c0_i32 = arith.constant 0 : i32
    %c0_i32_0 = arith.constant 0 : i32
    %c0_i32_1 = arith.constant 0 : i32
    return %c0_i32, %c0_i32_0 : i32, i32
  }
  func.func @transform_3(%arg0: i32) -> (i32, i32, i32) {
    %c0_i32 = arith.constant 0 : i32
    %c0_i32_0 = arith.constant 0 : i32
    %c0_i32_1 = arith.constant 0 : i32
    %c0_i32_2 = arith.constant 0 : i32
    return %c0_i32, %c0_i32_0, %c0_i32_1 : i32, i32, i32
  }
  func.func @transform_4(%arg0: i32) -> (i32, i32, i32) {
    %c0_i32 = arith.constant 0 : i32
    %c0_i32_0 = arith.constant 0 : i32
    %c0_i32_1 = arith.constant 0 : i32
    %c0_i32_2 = arith.constant 0 : i32
    return %c0_i32, %c0_i32_0, %c0_i32_1 : i32, i32, i32
  }
  func.func @transform_5(%arg0: i32) -> (i32, i32, i32, i32) {
    %c0_i32 = arith.constant 0 : i32
    %c0_i32_0 = arith.constant 0 : i32
    %c0_i32_1 = arith.constant 0 : i32
    %c0_i32_2 = arith.constant 0 : i32
    %c0_i32_3 = arith.constant 0 : i32
    return %c0_i32, %c0_i32_0, %c0_i32_1, %c0_i32_2 : i32, i32, i32, i32
  }
  func.func @transform_6(%arg0: i32) -> (i32, i32, i32, i32) {
    %c0_i32 = arith.constant 0 : i32
    %c0_i32_0 = arith.constant 0 : i32
    %c0_i32_1 = arith.constant 0 : i32
    %c0_i32_2 = arith.constant 0 : i32
    return %arg0, %c0_i32, %c0_i32_0, %c0_i32_1 : i32, i32, i32, i32
  }
}

</mosaic_0001>

<bundles_post_ra>
// kernel: tpu_custom_call.1
= control target key start
LH: loop header
LB: loop body
LE: loop exit
PB: predicated region body
PF: predicated region fallthrough
CT: control target
= control target key end

     0   :  { %11 = vsyncpa [#allocation4], 0  ;;  %s2852_s0 = inlined_call_operand.hbm [shape: f32[2,4,16,16], index: 0, kind: input, shape index: {}]   ;;  %s2853_s1 = inlined_call_operand.vmem [shape: f32[4,1,2], index: 1, kind: input, shape index: {}]   ;;  %s2854_s2 = inlined_call_operand.vmem [shape: f32[1,2], index: 2, kind: input, shape index: {}]   ;;  %s2855_s3 = inlined_call_operand.vmem [shape: f32[4,1,2], index: 3, kind: input, shape index: {}]   ;;  %s2856_s4 = inlined_call_operand.vmem [shape: f32[4,1,1], index: 4, kind: input, shape index: {}]   ;;  %s2857_s5 = inlined_call_operand.hbm [shape: f32[2,7,16,16], index: 5, kind: input, shape index: {}]   ;;  %s2858_s6 = inlined_call_operand.hbm [shape: f32[2,4,16,16], index: 6, kind: output, shape index: {}]  }
   0x1   :  { %13 = vsyncpa [#allocation4 + $0x1], 0 }
   0x2   :  { %14 = vsyncpa [#allocation7], 0 }
   0x3   :  { %15 = vsyncpa [#allocation5], 0 }
   0x4   :  { %17 = vsyncpa [#allocation5 + $0x1], 0  ;;  %s2380_s21 = smov 0   ;;  %s2382_s22 = smov 0  }
   0x5   :  { %s2384_s23 = smov 0   ;;  %s2386_s24 = smov 0  }
   0x6 LB: > { %s2401_s25 = sadd.s32 4294967295, %s2335_s24   ;;  %s1837_s26 = sadd.s32 4294967294, %s2335_s24   ;;  %s2335_s24 = sphi %s2386_s24, %s2878_s24   ;;  %s2331_s23 = sphi %s2384_s23, %s2877_s23   ;;  %s2327_s22 = sphi %s2382_s22, %s2876_s22   ;;  %s2323_s21 = sphi %s2380_s21, %s2875_s21  }
   0x7   : > { %p43_p0 = scmp.ne.s32.totalorder %s2327_s22, %s2323_s21  ;;  %p2859_p1 = scmp.eq.s32.totalorder %s2401_s25, 0 }
   0x8   : > { %p178_p3 = scmp.eq.s32.totalorder %s1837_s26, 1  ;;  %p1838_p5 = scmp.ge.s32.totalorder %s2335_s24, 1 }
   0x9   : > { %p2410_p4 = por %p2859_p1, %p43_p0  ;;  %p185_p7 = scmp.lt.s32.totalorder %s2335_s24, 3 }
   0xa   : > { %p2415_p6 = por %p178_p3, %p43_p0  ;;  %s2337_s30 = smov [#allocation6]  }
   0xb   : > { %s2862_s27 = scalar_select %p2410_p4, 1, 0 }
   0xc   : > { %s2863_s28 = scalar_select %p2415_p6, 1, 0 }
   0xd   : > { %p2420_p8 = pnand %p1838_p5, %p185_p7  ;;  %s209_s7 = sshll.u32 %s2337_s30, 4  ;;  %s2424_s7 = int_to_ptr.vmem [resolvable:$true] %s209_s7 }
   0xe   : > { %s2436_s9 = sadd.s32 1, %s2335_s24   ;;  %s30_s10 = sadd.s32 1, %s2331_s23 }
   0xf   : > { %s2864_s29 = scalar_select %p2420_p8, 1, 0 }
  0x10   : > { %p2129_p9 = pneg %p2420_p8  ;;  %s27_s11 = ssub.s32 %s2335_s24, %s2436_s9 }
  0x11   : > { %s2207_s14 = scalar_lea.hbm %s2857_s5, 3584 }
  0x12   : > { %p2431_p11 = pnand %p2129_p9, %p2859_p1  ;;  %p2208_p12 = scmp.ne.s32.totalorder %s2857_s5, %s2207_s14 }
  0x13   : > { %p2214_p5 = scmp.lt.u32.totalorder %s2207_s14, %s2857_s5 }
  0x14   : > { %p2209_p13 = pneg %p2431_p11 }
  0x16   : > { %p2210_p0 = pnand %p2209_p13, %p2208_p12 }
  0x18   : > { %p2211_p3 = pneg %p2210_p0 }
  0x1a   : > { %p2216_p7 = pnand %p2214_p5, %p2211_p3 }
  0x1c   : > { %2219 = shalt.err (!%p2216_p7)
}
  0x1d   : > { %s2220_s19 = scalar_lea.vmem %s2424_s7, 3584  ;;  %p2228_p2 = scmp.lt.s32.totalorder %s2424_s7, %s2424_s7 }
  0x1e   : > { %p2221_p9 = scmp.ne.s32.totalorder %s2424_s7, %s2220_s19  ;;  %p2229_p6 = scmp.lt.s32.totalorder %s2220_s19, %s2220_s19 }
  0x20   : > { %p2223_p10 = pnand %p2221_p9, %p2209_p13  ;;  %p2230_p4 = por %p2229_p6, %p2228_p2 }
  0x22   : > { %p2224_p1 = pneg %p2223_p10 }
  0x24   : > { %p2231_p8 = pnand %p2230_p4, %p2224_p1 }
  0x26   : > { %2234 = shalt.err (!%p2231_p8)
}
  0x27   : > { %s2338_s20 = smov 128   ;;  %s2339_s26 = smov 8  }
  0x28   : > { %2132 = dma.hbm_to_vmem [thread:$0]  (!%p2431_p11), %s2857_s5, 3584, %s2424_s7, [#allocation7], %s2338_s20, %s2338_s20, %s2339_s26  }
  0x29   : > { %p28_p1 = scmp.eq.s32.totalorder %s27_s11, 0  ;;  %p37_p2 = scmp.ne.s32.totalorder %s2331_s23, %s2327_s22 }
  0x2a   : > { %p38_p4 = scmp.eq.s32.totalorder %s2335_s24, 0  ;;  %p2142_p6 = scmp.lt.s32.totalorder %s2335_s24, 2 }
  0x2b   : > { %s2470_s13 = scalar_select %p28_p1, %s2331_s23, %s30_s10  }
  0x2c   : > { %p39_p8 = por %p38_p4, %p37_p2  ;;  %p2866_p10 = scmp.eq.s32.totalorder %s2401_s25, 1 }
  0x2d   : > { %s223_s8 = sand.u32 1, %s2331_s23   ;;  %s1887_s15 = sshll.u32 %s2335_s24, 10 }
  0x2e   : > { %p2474_p12 = por %p2866_p10, %p37_p2  ;;  %s1841_s16 = sshll.u32 %s223_s8, 6 }
  0x2f   : > { %s2483_s19 = scalar_lea.hbm %s2852_s0, %s1887_s15  ;;  %s227_s7 = scalar_lea.vmem [#allocation3], %s1841_s16 }
  0x30   : > { %s234_s10 = sshll.u32 %s227_s7, 4  ;;  %p2485_p11 = pnand %p2142_p6, %p39_p8  ;;  %s2489_s10 = int_to_ptr.vmem [resolvable:$true] %s234_s10 }
  0x31   : > { %s2491_s30 = scalar_lea.sflag [#allocation4], %s223_s8  ;;  %s2235_s12 = scalar_lea.hbm %s2483_s19, 1024 }
  0x32   : > { %p2236_p13 = scmp.ne.s32.totalorder %s2483_s19, %s2235_s12  ;;  %p2237_p0 = pneg %p2485_p11 }
  0x33   : > { %s2240_s17 = scalar_lea.hbm %s2852_s0, 2048  ;;  %p2241_p7 = scmp.lt.u32.totalorder %s2483_s19, %s2852_s0 }
  0x34   : > { %p2238_p3 = pnand %p2237_p0, %p2236_p13  ;;  %p2242_p9 = scmp.lt.u32.totalorder %s2240_s17, %s2235_s12 }
  0x35   : > { %p2244_p2 = scmp.lt.u32.totalorder %s2235_s12, %s2483_s19 }
  0x36   : > { %p2239_p5 = pneg %p2238_p3  ;;  %p2243_p1 = por %p2242_p9, %p2241_p7 }
  0x38   : > { %p2245_p4 = por %p2244_p2, %p2243_p1 }
  0x3a   : > { %p2246_p6 = pnand %p2245_p4, %p2239_p5 }
  0x3c   : > { %2249 = shalt.err (!%p2246_p6)
}
  0x3d   : > { %s2250_s8 = scalar_lea.vmem %s2489_s10, 1024  ;;  %s2340_s15 = smov [#allocation3]  }
  0x3e   : > { %p2251_p8 = scmp.ne.s32.totalorder %s2489_s10, %s2250_s8  ;;  %s2255_s16 = sshll.u32 %s2340_s15, 4  ;;  %s2256_s16 = int_to_ptr.vmem [resolvable:$false] %s2255_s16 }
  0x3f   : > { %s2257_s18 = scalar_lea.vmem %s2256_s16, 2048  ;;  %p2258_p3 = scmp.lt.s32.totalorder %s2489_s10, %s2256_s16 }
  0x40   : > { %p2253_p10 = pnand %p2251_p8, %p2237_p0  ;;  %p2259_p7 = scmp.lt.s32.totalorder %s2257_s18, %s2250_s8 }
  0x42   : > { %p2254_p13 = pneg %p2253_p10  ;;  %p2260_p9 = por %p2259_p7, %p2258_p3 }
  0x44   : > { %p2261_p1 = pnand %p2260_p9, %p2254_p13 }
  0x46   : > { %2264 = shalt.err (!%p2261_p1)
}
  0x47   : > { %2136 = dma.hbm_to_vmem [thread:$0]  (!%p2485_p11), %s2483_s19, 1024, %s2489_s10, %s2491_s30, %s2338_s20, %s2338_s20, %s2339_s26  }
  0x48   : > { %p2869_p0 = scmp.ne.s32.totalorder %s2864_s29, 0 }
  0x49   : > { %s2525_s12 = sand.u32 (!%p2869_p0), 1, %s2327_s22   ;;  %p2870_p5 = scmp.ne.s32.totalorder (!%p2869_p0), %s2862_s27, 0 }
  0x4a   : > { %246 = sbr.rel (%p2869_p0) target bundleno = 858 (0x35a), region = 44  ;;  %s1845_s17 = sshll.u32 (!%p2869_p0), %s2525_s12, 6 }
  0x4b   : > { %s249_s7 = scalar_lea.sflag (!%p2869_p0), [#allocation4], %s2525_s12  ;;  %s2531_s11 = scalar_lea.vmem (!%p2869_p0), [#allocation3], %s1845_s17 }
  0x51   : > { %2310 = dma.done.wait (%p2870_p5), %s249_s7, 1024  }
  0x52   : > { %2312 = vsyncadd (%p2870_p5), %s249_s7, 4294966272  ;;  %p2871_p11 = scmp.eq.s32.totalorder %s2401_s25, 0 }
  0x54   : > { %2314 = dma.done.wait (%p2871_p11), [#allocation7], 3584   ;;  %p2872_p2 = pmov %p2871_p11 }
  0x55   : > { %vm293_vm0 = vcmask 130048   ;;  %v2542_v0 = vld [vmem:[%s2531_s11 + $0x10] sm:$0xff]  ;;  %v2545_v1 = vld [vmem:[%s2531_s11] sm:$0xff]  ;;  %v2548_v2 = vld [vmem:[%s2531_s11 + $0x18] sm:$0xff]  ;;  %vm411_vm1 = vcmask 8192   ;;  %vm547_vm2 = vcmask 128000  }
  0x56   : > { %2316 = vsyncadd (%p2872_p2), [#allocation7], 4294963712  ;;  %v352_v3 = vsel %vm293_vm0, %v2542_v0, 0.0  ;;  %v346_v4 = vsel %vm293_vm0, %v2545_v1, 0.0  ;;  %v2555_v5 = vld [vmem:[%s2531_s11 + $0x8] sm:$0xff]  ;;  %v355_v6 = vsel %vm293_vm0, %v2548_v2, 0.0 }
  0x57   : > { %353 = vadd.xlane.f32.xlu1 %v352_v3  ;;  %347 = vadd.xlane.f32.xlu0 %v346_v4  ;;  %v349_v7 = vsel %vm293_vm0, %v2555_v5, 0.0  ;;  %v297_v8 = vsel %vm293_vm0, %v2555_v5, -inf  ;;  %v294_v9 = vsel %vm293_vm0, %v2545_v1, -inf  ;;  %v303_v10 = vsel %vm293_vm0, %v2548_v2, -inf  ;;  %v2570_v12 = vld [vmem:[%s2531_s11 + $0x28] sm:$0xff]  ;;  %v2573_v13 = vld [vmem:[%s2531_s11 + $0x20] sm:$0xff] }
  0x58   : > { %v300_v11 = vsel %vm293_vm0, %v2542_v0, -inf  ;;  %v361_v14 = vsel %vm293_vm0, %v2570_v12, 0.0  ;;  %v358_v15 = vsel %vm293_vm0, %v2573_v13, 0.0  ;;  %v309_v16 = vsel %vm293_vm0, %v2570_v12, -inf  ;;  %v2584_v18 = vld [vmem:[%s2531_s11 + $0x38] sm:$0xff]  ;;  %v2587_v19 = vld [vmem:[%s2531_s11 + $0x30] sm:$0xff] }
  0x59   : > { %v306_v17 = vsel %vm293_vm0, %v2573_v13, -inf  ;;  %v367_v20 = vsel %vm293_vm0, %v2584_v18, 0.0  ;;  %v364_v21 = vsel %vm293_vm0, %v2587_v19, 0.0  ;;  %v315_v22 = vsel %vm293_vm0, %v2584_v18, -inf  ;;  %s1888_s19 = sshll.u32 %s2401_s25, 10  ;;  %s284_s10 = scalar_lea.vmem [#allocation8], %s1845_s17 }
  0x5a   : > { %v312_v23 = vsel %vm293_vm0, %v2587_v19, -inf  ;;  %s1754_s30 = sshll.u32 %s284_s10, 4  ;;  %s2794_s8 = scalar_lea.hbm %s2858_s6, %s1888_s19  ;;  %s2796_s30 = int_to_ptr.vmem [resolvable:$true] %s1754_s30 }
  0x5b   : > { %356 = vadd.xlane.f32.xlu1 %v355_v6  ;;  %350 = vadd.xlane.f32.xlu0 %v349_v7  ;;  %s1741_s15 = scalar_lea.sflag [#allocation5], %s2525_s12  ;;  %s2265_s16 = scalar_lea.vmem %s2796_s30, 1024 }
  0x5c   : > { %p2266_p4 = scmp.ne.s32.totalorder %s2796_s30, %s2265_s16  ;;  %s2342_s18 = smov [#allocation8]  }
  0x5d   : > { %s2269_s7 = sshll.u32 %s2342_s18, 4  ;;  %s2270_s7 = int_to_ptr.vmem [resolvable:$false] %s2269_s7 }
  0x5e   : > { %p2267_p6 = pnand %p2266_p4, %p2474_p12  ;;  %s2271_s11 = scalar_lea.vmem %s2270_s7, 2048 }
  0x5f   : > { %298 = vmax.xlane.f32.xlu1 %v297_v8  ;;  %295 = vmax.xlane.f32.xlu0 %v294_v9  ;;  %p2272_p10 = scmp.lt.s32.totalorder %s2796_s30, %s2270_s7  ;;  %p2273_p13 = scmp.lt.s32.totalorder %s2271_s11, %s2265_s16 }
  0x60   : > { %p2268_p8 = pneg %p2267_p6 }
  0x61   : > { %p2274_p3 = por %p2273_p13, %p2272_p10 }
  0x63   : > { %304 = vmax.xlane.f32.xlu1 %v303_v10  ;;  %301 = vmax.xlane.f32.xlu0 %v300_v11  ;;  %p2275_p7 = pnand %p2274_p3, %p2268_p8 }
  0x67   : > { %362 = vadd.xlane.f32.xlu1 %v361_v14  ;;  %359 = vadd.xlane.f32.xlu0 %v358_v15 }
  0x6b   : > { %310 = vmax.xlane.f32.xlu1 %v309_v16  ;;  %307 = vmax.xlane.f32.xlu0 %v306_v17 }
  0x6f   : > { %368 = vadd.xlane.f32.xlu1 %v367_v20  ;;  %365 = vadd.xlane.f32.xlu0 %v364_v21 }
  0x73   : > { %316 = vmax.xlane.f32.xlu1 %v315_v22  ;;  %313 = vmax.xlane.f32.xlu0 %v312_v23  ;;  %v403_v23 = vld [vmem:[%s2853_s1 + $0x1] sm:$0x1] }
  0xe4   : > { %v354_v24 = vpop.xlane.xlu1 %353  ;;  %v348_v25 = vpop.xlane.xlu0 %347 }
  0xe8   : > { %v357_v26 = vpop.xlane.xlu1 %356  ;;  %v351_v27 = vpop.xlane.xlu0 %350 }
  0xe9   : > { %v377_v28 = vadd.f32 %v357_v26, %v354_v24  ;;  %v370_v29 = vadd.f32 %v351_v27, %v348_v25  ;;  %v402_v24 = vld [vmem:[%s2853_s1] sm:$0x1] }
  0xeb   : > { %v378_v30 = vrot.slane %v377_v28, 4  ;;  %v371_v31 = vrot.slane %v370_v29, 4 }
  0xec   : > { %v299_v32 = vpop.xlane.xlu1 %298  ;;  %v296_v33 = vpop.xlane.xlu0 %295 }
  0xed   : > { %v379_v34 = vadd.f32 %v378_v30, %v377_v28  ;;  %v372_v35 = vadd.f32 %v371_v31, %v370_v29  ;;  %v318_v36 = vmax.f32 %v296_v33, %v299_v32 }
  0xef   : > { %v380_v37 = vrot.slane %v379_v34, 2  ;;  %v373_v38 = vrot.slane %v372_v35, 2  ;;  %v319_v41 = vrot.slane %v318_v36, 4 }
  0xf0   : > { %v305_v39 = vpop.xlane.xlu1 %304  ;;  %v302_v40 = vpop.xlane.xlu0 %301 }
  0xf1   : > { %v325_v42 = vmax.f32 %v302_v40, %v305_v39  ;;  %v381_v44 = vadd.f32 %v380_v37, %v379_v34  ;;  %v374_v45 = vadd.f32 %v373_v38, %v372_v35  ;;  %v320_v48 = vmax.f32 %v318_v36, %v319_v41  ;;  %v404_v35 = vld [vmem:[%s2853_s1 + $0x2] sm:$0x1] }
  0xf3   : > { %v326_v43 = vrot.slane %v325_v42, 4  ;;  %v382_v52 = vrot.slane %v381_v44, 1  ;;  %v375_v53 = vrot.slane %v374_v45, 1  ;;  %v321_v57 = vrot.slane %v320_v48, 2 }
  0xf4   : > { %v363_v46 = vpop.xlane.xlu1 %362  ;;  %v360_v47 = vpop.xlane.xlu0 %359 }
  0xf5   : > { %v327_v49 = vmax.f32 %v325_v42, %v326_v43  ;;  %v384_v50 = vadd.f32 %v363_v46, %v360_v47  ;;  %v383_v61 = vadd.f32 %v382_v52, %v381_v44  ;;  %v376_v62 = vadd.f32 %v375_v53, %v374_v45  ;;  %v405_v52 = vld [vmem:[%s2853_s1 + $0x3] sm:$0x1] }
  0xf6   : > { %v322_v7 = vmax.f32 %v320_v48, %v321_v57 }
  0xf7   : > { %v328_v51 = vrot.slane %v327_v49, 2  ;;  %v385_v54 = vrot.slane %v384_v50, 4  ;;  %v399_v15 = vmul.f32 0.00390625, %v383_v61  ;;  %v398_v16 = vmul.f32 0.00390625, %v376_v62 }
  0xf8   : > { %v311_v55 = vpop.xlane.xlu1 %310  ;;  %v308_v56 = vpop.xlane.xlu0 %307  ;;  %v323_v25 = vrot.slane %v322_v7, 1 }
  0xf9   : > { %v386_v58 = vadd.f32 %v385_v54, %v384_v50  ;;  %v332_v59 = vmax.f32 %v308_v56, %v311_v55  ;;  %v329_v60 = vmax.f32 %v327_v49, %v328_v51  ;;  %v422_v33 = vmul.f32 %v403_v23, %v399_v15 }
  0xfa   : > { %v421_v34 = vmul.f32 %v402_v24, %v398_v16  ;;  %v324_v38 = vmax.f32 %v322_v7, %v323_v25 }
  0xfb   : > { %v387_v63 = vrot.slane %v386_v58, 2  ;;  %v333_v3 = vrot.slane %v332_v59, 4  ;;  %v330_v11 = vrot.slane %v329_v60, 1  ;;  %v426_v46 = vsel %vm411_vm1, %v422_v33, 0.0  ;;  %v550_v33 = vld [vmem:[#allocation6 + $0x8] sm:$0xff] }
  0xfc   : > { %v369_v4 = vpop.xlane.xlu1 %368  ;;  %v366_v6 = vpop.xlane.xlu0 %365  ;;  %v425_v47 = vsel %vm411_vm1, %v421_v34, 0.0  ;;  %v407_v48 = vmul.f32 %v402_v24, %v324_v38  ;;  %v888_v38 = vld [vmem:[#allocation6 + $0x90] sm:$0xff] }
  0xfd   : > { %v391_v8 = vadd.f32 %v369_v4, %v366_v6  ;;  %v388_v9 = vadd.f32 %v387_v63, %v386_v58  ;;  %v334_v10 = vmax.f32 %v332_v59, %v333_v3  ;;  %v331_v30 = vmax.f32 %v329_v60, %v330_v11  ;;  %v406_v6 = vld [vmem:[%s2854_s2] sm:$0x1] }
  0xfe   : > { %v427_v57 = vadd.f32 %v426_v46, %v425_v47  ;;  %v412_v58 = vsel %vm411_vm1, %v407_v48, 0.0  ;;  %v458_v48 = vld [vmem:[%s2856_s4 + $0x3] sm:$0x1] }
  0xff   : > { %v392_v14 = vrot.slane %v391_v8, 4  ;;  %v389_v17 = vrot.slane %v388_v9, 1  ;;  %v335_v20 = vrot.slane %v334_v10, 2  ;;  %v408_v42 = vmul.f32 %v403_v23, %v331_v30  ;;  %v437_v23 = vld [vmem:[%s2855_s3 + $0x2] sm:$0x1] }
 0x100   : > { %v317_v21 = vpop.xlane.xlu1 %316  ;;  %v314_v22 = vpop.xlane.xlu0 %313 }
 0x101   : > { %v393_v26 = vadd.f32 %v392_v14, %v391_v8  ;;  %v339_v27 = vmax.f32 %v314_v22, %v317_v21  ;;  %v390_v28 = vadd.f32 %v389_v17, %v388_v9  ;;  %v336_v29 = vmax.f32 %v334_v10, %v335_v20  ;;  %v436_v17 = vld [vmem:[%s2855_s3 + $0x1] sm:$0x1]  ;;  %v435_v20 = vld [vmem:[%s2855_s3] sm:$0x1]  ;;  %v438_v22 = vld [vmem:[%s2855_s3 + $0x3] sm:$0x1] }
 0x102   : > { %v413_v53 = vsel %vm411_vm1, %v408_v42, 0.0  ;;  %v727_v42 = vld [vmem:[#allocation6 + $0x88] sm:$0xff] }
 0x103   : > { %v394_v31 = vrot.slane %v393_v26, 2  ;;  %v340_v32 = vrot.slane %v339_v27, 4  ;;  %v400_v36 = vmul.f32 0.00390625, %v390_v28  ;;  %v337_v37 = vrot.slane %v336_v29, 1 }
 0x104   : > { %v414_v62 = vadd.f32 %v413_v53, %v412_v58 }
 0x105   : > { %v395_v39 = vadd.f32 %v394_v31, %v393_v26  ;;  %v341_v40 = vmax.f32 %v339_v27, %v340_v32  ;;  %v338_v41 = vmax.f32 %v336_v29, %v337_v37  ;;  %v423_v43 = vmul.f32 %v404_v35, %v400_v36  ;;  %v549_v32 = vld [vmem:[#allocation6] sm:$0xff]  ;;  %v553_v36 = vld [vmem:[#allocation6 + $0x78] sm:$0xff] }
 0x106   : > { %v2047_v34 = vpack.c.bf16 %v550_v33, %v549_v32 }
 0x107   : > { %v396_v44 = vrot.slane %v395_v39, 1  ;;  %v342_v45 = vrot.slane %v341_v40, 2  ;;  %v409_v49 = vmul.f32 %v404_v35, %v338_v41  ;;  %v428_v54 = vsel %vm411_vm1, %v423_v43, 0.0  ;;  %v552_v35 = vld [vmem:[#allocation6 + $0x70] sm:$0xff]  ;;  %v726_v41 = vld [vmem:[#allocation6 + $0x80] sm:$0xff] }
 0x108   : > { %v429_v63 = vadd.f32 %v428_v54, %v427_v57  ;;  %2048 = vmatprep.subr.bf16.mxu0 %v2047_v34  ;;  %v2043_v37 = vpack.c.bf16 %v553_v36, %v552_v35  ;;  %v2639_v43 = vpack.c.bf16 %v727_v42, %v726_v41  ;;  %v462_v54 = vmul.f32 2.0, %v458_v48 }
 0x109   : > { %v397_v50 = vadd.f32 %v396_v44, %v395_v39  ;;  %v343_v51 = vmax.f32 %v341_v40, %v342_v45  ;;  %v415_v59 = vsel %vm411_vm1, %v409_v49, 0.0  ;;  %2050 = vmatpush3.bf16.msra.mxu0 %v2047_v34  ;;  %v889_v39 = vld [vmem:[#allocation6 + $0x98] sm:$0xff]  ;;  %v456_v44 = vld [vmem:[%s2856_s4 + $0x1] sm:$0x1]  ;;  %v455_v45 = vld [vmem:[%s2856_s4] sm:$0x1] }
 0x10a   : > { %v416_v7 = vadd.f32 %v415_v59, %v414_v62  ;;  %2044 = vmatprep.subr.bf16.mxu1 %v2043_v37  ;;  %v2636_v40 = vpack.c.bf16 %v889_v39, %v888_v38  ;;  %v460_v46 = vmul.f32 2.0, %v456_v44  ;;  %v459_v47 = vmul.f32 2.0, %v455_v45  ;;  %v457_v49 = vld [vmem:[%s2856_s4 + $0x2] sm:$0x1] }
 0x10b   : > { %v401_v55 = vmul.f32 0.00390625, %v397_v50  ;;  %v344_v56 = vrot.slane %v343_v51, 1  ;;  %2046 = vmatpush3.bf16.msra.mxu1 %v2043_v37 }
 0x10c   : > { %2060 = vmatprep.subr.bf16.mxu0 %v2636_v40  ;;  %2052 = vmatprep.subr.bf16.mxu1 %v2639_v43 }
 0x10d   : > { %v424_v60 = vmul.f32 %v405_v52, %v401_v55  ;;  %v345_v61 = vmax.f32 %v343_v51, %v344_v56  ;;  %v461_v55 = vmul.f32 2.0, %v457_v49 }
 0x10f   : > { %v430_v3 = vsel %vm411_vm1, %v424_v60, 0.0  ;;  %v410_v4 = vmul.f32 %v405_v52, %v345_v61 }
 0x110   : > { %v431_v8 = vadd.f32 %v430_v3, %v429_v63 }
 0x111   : > { %v417_v9 = vsel %vm411_vm1, %v410_v4, 0.0 }
 0x112   : > { %v418_v10 = vadd.f32 %v417_v9, %v416_v7  ;;  %v432_v11 = vadd.f32 %v431_v8, %v406_v6 }
 0x114   : > { %v419_v14 = vadd.f32 %v418_v10, %v406_v6  ;;  %v433_v16 = vmax.f32 %v432_v11, 0.0 }
 0x116   : > { %v420_v15 = vmax.f32 %v419_v14, 0.0 }
 0x118   : > { %v434_v21 = vadd.f32 %v433_v16, %v420_v15 }
 0x11a   : > { %v440_v24 = vmul.f32 %v436_v17, %v434_v21  ;;  %v439_v25 = vmul.f32 %v435_v20, %v434_v21  ;;  %v442_v28 = vmul.f32 %v438_v22, %v434_v21  ;;  %v441_v29 = vmul.f32 %v437_v23, %v434_v21 }
 0x11c   : > { %v446_v26 = vsel %vm411_vm1, %v440_v24, 0.0  ;;  %v443_v27 = vsel %vm411_vm1, %v439_v25, 0.0  ;;  %v452_v30 = vsel %vm411_vm1, %v442_v28, 0.0  ;;  %v449_v31 = vsel %vm411_vm1, %v441_v29, 0.0 }
 0x11d   : > { %447 = vadd.xlane.f32.xlu1 %v446_v26  ;;  %444 = vadd.xlane.f32.xlu0 %v443_v27 }
 0x121   : > { %453 = vadd.xlane.f32.xlu1 %v452_v30  ;;  %450 = vadd.xlane.f32.xlu0 %v449_v31 }
 0x1aa   : > { %v448_v50 = vpop.xlane.xlu1 %447  ;;  %v445_v51 = vpop.xlane.xlu0 %444 }
 0x1ab   : > { %v464_v52 = vadd.f32 %v460_v46, %v448_v50  ;;  %v463_v53 = vadd.f32 %v459_v47, %v445_v51 }
 0x1ad   : > { %v1849_v56 = vmul.f32 -1.442695, %v464_v52  ;;  %v1848_v57 = vmul.f32 -1.442695, %v463_v53 }
 0x1ae   : > { %v454_v58 = vpop.xlane.xlu1 %453  ;;  %v451_v59 = vpop.xlane.xlu0 %450 }
 0x1af   : > { %2183 = vpow2.f32 %v1849_v56  ;;  %v466_v60 = vadd.f32 %v462_v54, %v454_v58  ;;  %v465_v61 = vadd.f32 %v461_v55, %v451_v59 }
 0x1b0   : > { %2185 = vpow2.f32 %v1848_v57 }
 0x1b1   : > { %v1851_v62 = vmul.f32 -1.442695, %v466_v60  ;;  %v1850_v63 = vmul.f32 -1.442695, %v465_v61  ;;  %v723_v60 = vld [vmem:[#allocation6 + $0x10] sm:$0xff]  ;;  %v724_v61 = vld [vmem:[#allocation6 + $0x18] sm:$0xff] }
 0x1b3   : > { %2187 = vpow2.f32 %v1851_v62  ;;  %v885_v62 = vld [vmem:[#allocation6 + $0x20] sm:$0xff] }
 0x1b4   : > { %2189 = vpow2.f32 %v1850_v63  ;;  %v886_v63 = vld [vmem:[#allocation6 + $0x28] sm:$0xff] }
 0x1b9   : > { %v2184_v3 = vpop.eup %2183 }
 0x1ba   : > { %v2186_v4 = vpop.eup %2185  ;;  %v480_v6 = vadd.f32 1.0, %v2184_v3 }
 0x1bb   : > { %v479_v7 = vadd.f32 1.0, %v2186_v4 }
 0x1bc   : > { %2191 = vrcp.f32 %v480_v6 }
 0x1bd   : > { %v2188_v8 = vpop.eup %2187  ;;  %2193 = vrcp.f32 %v479_v7 }
 0x1be   : > { %v2190_v9 = vpop.eup %2189  ;;  %v482_v10 = vadd.f32 1.0, %v2188_v8  ;;  %v2055_v8 = vpack.c.bf16 %v724_v61, %v723_v60 }
 0x1bf   : > { %v481_v11 = vadd.f32 1.0, %v2190_v9  ;;  %v2063_v9 = vpack.c.bf16 %v886_v63, %v885_v62 }
 0x1c0   : > { %2195 = vrcp.f32 %v482_v10  ;;  %v1050_v10 = vld [vmem:[#allocation6 + $0xa0] sm:$0xff] }
 0x1c1   : > { %2197 = vrcp.f32 %v481_v11  ;;  %v1051_v11 = vld [vmem:[#allocation6 + $0xa8] sm:$0xff] }
 0x1c6   : > { %v2192_v14 = vpop.eup %2191 }
 0x1c7   : > { %v2194_v15 = vpop.eup %2193 }
 0x1c8   : > { %2113 = vpush %v2194_v15  ;;  %v1213_v15 = vld [vmem:[#allocation6 + $0xb8] sm:$0xff] }
 0x1c9   : > { %2115 = vpush %v2192_v14  ;;  %v1212_v14 = vld [vmem:[#allocation6 + $0xb0] sm:$0xff] }
 0x1ca   : > { %v2196_v16 = vpop.eup %2195 }
 0x1cb   : > { %v2198_v17 = vpop.eup %2197 }
 0x1cc   : > { %2117 = vpush %v2198_v17  ;;  %v2075_v17 = vpack.c.bf16 %v1213_v15, %v1212_v14 }
 0x1cd   : > { %2119 = vpush %v2196_v16  ;;  %v2067_v16 = vpack.c.bf16 %v1051_v11, %v1050_v10 }
 0x1f9   : > { %s2114_s27 = spop %2113 }
 0x1fa   : > { %v2654_v20 = vstv %s2114_s27  ;;  %s2116_s29 = spop %2115 }
 0x1fb   : > { %v507_v21 = vmul.f32 %v2654_v20, %v2545_v1  ;;  %v508_v22 = vmul.f32 %v2654_v20, %v2555_v5  ;;  %v2660_v23 = vstv %s2116_s29 }
 0x1fc   : > { %v509_v24 = vmul.f32 %v2660_v23, %v2542_v0  ;;  %v510_v25 = vmul.f32 %v2660_v23, %v2548_v2 }
 0x1fd   : > { %s2118_s20 = spop %2117  ;;  %v529_v26 = vsel %vm293_vm0, %v507_v21, 0.0  ;;  %v536_v27 = vsel %vm293_vm0, %v508_v22, 0.0  ;;  %v515_v30 = vsel %vm293_vm0, %v507_v21, -inf  ;;  %v522_v31 = vsel %vm293_vm0, %v508_v22, -inf  ;;  %v1047_v21 = vld [vmem:[#allocation6 + $0x30] sm:$0xff]  ;;  %v1048_v22 = vld [vmem:[#allocation6 + $0x38] sm:$0xff] }
 0x1fe   : > { %v530_v28 = vsel %vm293_vm0, %v509_v24, 0.0  ;;  %v537_v29 = vsel %vm293_vm0, %v510_v25, 0.0  ;;  %s2120_s26 = spop %2119  ;;  %v2672_v32 = vstv %s2118_s20  ;;  %v516_v38 = vsel %vm293_vm0, %v509_v24, -inf }
 0x1ff   : > { %v2674_v33 = vstv %s2120_s26  ;;  %v511_v34 = vmul.f32 %v2672_v32, %v2573_v13  ;;  %v512_v35 = vmul.f32 %v2672_v32, %v2570_v12  ;;  %v523_v39 = vsel %vm293_vm0, %v510_v25, -inf  ;;  %v1536_v25 = vld [vmem:[#allocation6 + $0xd0] sm:$0xff] }
 0x200   : > { %v513_v36 = vmul.f32 %v2674_v33, %v2587_v19  ;;  %v514_v37 = vmul.f32 %v2674_v33, %v2584_v18  ;;  %v531_v41 = vadd.f32 %v530_v28, %v529_v26  ;;  %v538_v42 = vadd.f32 %v537_v29, %v536_v27  ;;  %v1537_v26 = vld [vmem:[#allocation6 + $0xd8] sm:$0xff]  ;;  %v1374_v28 = vld [vmem:[#allocation6 + $0xc0] sm:$0xff]  ;;  %v1375_v29 = vld [vmem:[#allocation6 + $0xc8] sm:$0xff] }
 0x201   : > { %v517_v44 = vsel %vm293_vm0, %v511_v34, -inf  ;;  %v524_v45 = vsel %vm293_vm0, %v512_v35, -inf  ;;  %v532_v46 = vsel %vm293_vm0, %v511_v34, 0.0  ;;  %v539_v47 = vsel %vm293_vm0, %v512_v35, 0.0  ;;  %v1533_v34 = vld [vmem:[#allocation6 + $0x60] sm:$0xff]  ;;  %v1534_v35 = vld [vmem:[#allocation6 + $0x68] sm:$0xff] }
 0x202   : > { %v518_v48 = vmax.f32 %v515_v30, %v517_v44  ;;  %v525_v49 = vmax.f32 %v522_v31, %v524_v45  ;;  %v533_v50 = vadd.f32 %v532_v46, %v531_v41  ;;  %v540_v51 = vadd.f32 %v539_v47, %v538_v42 }
 0x203   : > { %v519_v52 = vsel %vm293_vm0, %v513_v36, -inf  ;;  %v526_v53 = vsel %vm293_vm0, %v514_v37, -inf  ;;  %v534_v54 = vsel %vm293_vm0, %v513_v36, 0.0  ;;  %v541_v55 = vsel %vm293_vm0, %v514_v37, 0.0  ;;  %v1371_v36 = vld [vmem:[#allocation6 + $0x50] sm:$0xff]  ;;  %v1372_v37 = vld [vmem:[#allocation6 + $0x58] sm:$0xff] }
 0x204   : > { %v520_v56 = vmax.f32 %v516_v38, %v519_v52  ;;  %v527_v57 = vmax.f32 %v523_v39, %v526_v53  ;;  %v535_v58 = vadd.f32 %v534_v54, %v533_v50  ;;  %v542_v59 = vadd.f32 %v541_v55, %v540_v51 }
 0x205   : > { %v2071_v27 = vpack.c.bf16 %v1048_v22, %v1047_v21  ;;  %v2091_v30 = vpack.c.bf16 %v1537_v26, %v1536_v25  ;;  %v2083_v31 = vpack.c.bf16 %v1375_v29, %v1374_v28  ;;  %v2095_v38 = vpack.c.bf16 %v1534_v35, %v1533_v34 }
 0x206   : > { %v2694_v3 = vmax.f32 %v518_v48, %v520_v56  ;;  %v2696_v4 = vmax.f32 %v525_v49, %v527_v57  ;;  %v2698_v6 = vmul.f32 0.25, %v535_v58  ;;  %v2700_v7 = vmul.f32 0.25, %v542_v59 }
 0x207   : > { %v2087_v39 = vpack.c.bf16 %v1372_v37, %v1371_v36  ;;  %v2341_v41 = vmov 0.0  }
 0x208   : > { %1956 = vmatprep.mubr.msk.f32.mxu0 %vm293_vm0, %v2694_v3  ;;  %1949 = vmatprep.mubr.msk.f32.mxu1 %vm293_vm0, %v2698_v6  ;;  %545 = vst.msk [vmem:[#allocation2] sm:$0xff] %vm293_vm0, %v2341_v41  ;;  %546 = vst.msk [vmem:[#allocation2 + $0x8] sm:$0xff] %vm293_vm0, %v2341_v41 }
 0x209   : > { %1957 = vmatmul.mubr.msk.f32.vlgmr.msra.gmra.mrb[0].mxu0 %vm293_vm0, %v2696_v4  ;;  %1950 = vmatmul.mubr.msk.f32.vlgmr.msra.gmra.mrb[0].mxu1 %vm293_vm0, %v2700_v7  ;;  %548 = vst.msk [vmem:[#allocation2 + $0x10] sm:$0x3f] %vm547_vm2, %v2341_v41 }
 0x20a   : > { %2062 = vmatpush3.bf16.msra.mxu0 %v2636_v40  ;;  %1977 = vmatprep.mubr.msk.f32.mxu0 %vm293_vm0, %v2698_v6  ;;  %v1209_v40 = vld [vmem:[#allocation6 + $0x40] sm:$0xff] }
 0x20b   : > { %2054 = vmatpush3.bf16.msra.mxu1 %v2639_v43  ;;  %1963 = vmatprep.mubr.msk.f32.mxu1 %vm293_vm0, %v2698_v6  ;;  %v1210_v43 = vld [vmem:[#allocation6 + $0x48] sm:$0xff] }
 0x20c   : > { %2056 = vmatprep.subr.bf16.mxu1 %v2055_v8  ;;  %2064 = vmatprep.subr.bf16.mxu0 %v2063_v9  ;;  %v2079_v24 = vpack.c.bf16 %v1210_v43, %v1209_v40 }
 0x20d   : > { %1978 = vmatmul.mubr.msk.f32.vlgmr.msra.gmra.mrb[2].mxu0 %vm293_vm0, %v2700_v7 }
 0x20e   : > { %1984 = vmatprep.mubr.msk.f32.mxu0 %vm293_vm0, %v2694_v3  ;;  %1964 = vmatmul.mubr.msk.f32.vlgmr.msra.gmra.mrb[2].mxu1 %vm293_vm0, %v2700_v7 }
 0x20f   : > { %2058 = vmatpush3.bf16.msra.mxu1 %v2055_v8  ;;  %1970 = vmatprep.mubr.msk.f32.mxu1 %vm293_vm0, %v2694_v3  ;;  %v716_v49 = vld [vmem:[#allocation2 + $0x6] sm:$0xff] }
 0x210   : > { %2066 = vmatpush3.bf16.msra.mxu0 %v2063_v9  ;;  %2068 = vmatprep.subr.bf16.mxu1 %v2067_v16  ;;  %v717_v45 = vld [vmem:[#allocation2 + $0xe] sm:$0xff] }
 0x211   : > { %2076 = vmatprep.subr.bf16.mxu0 %v2075_v17 }
 0x215   : > { %1985 = vmatmul.mubr.msk.f32.vlgmr.msra.gmra.mrb[2].mxu0 %vm293_vm0, %v2696_v4 }
 0x216   : > { %2078 = vmatpush3.bf16.msra.mxu0 %v2075_v17  ;;  %2005 = vmatprep.mubr.msk.f32.mxu0 %vm293_vm0, %v2698_v6 }
 0x217   : > { %1971 = vmatmul.mubr.msk.f32.vlgmr.msra.gmra.mrb[2].mxu1 %vm293_vm0, %v2696_v4  ;;  %2080 = vmatprep.subr.bf16.mxu0 %v2079_v24 }
 0x218   : > { %2070 = vmatpush3.bf16.msra.mxu1 %v2067_v16  ;;  %1991 = vmatprep.mubr.msk.f32.mxu1 %vm293_vm0, %v2698_v6 }
 0x219   : > { %2006 = vmatmul.mubr.msk.f32.vlgmr.msra.gmra.mrb[4].mxu0 %vm293_vm0, %v2700_v7  ;;  %2072 = vmatprep.subr.bf16.mxu1 %v2071_v27 }
 0x21a   : > { %2012 = vmatprep.mubr.msk.f32.mxu0 %vm293_vm0, %v2694_v3  ;;  %2082 = vmatpush3.bf16.msra.mxu0 %v2079_v24 }
 0x21b   : > { %1992 = vmatmul.mubr.msk.f32.vlgmr.msra.gmra.mrb[4].mxu1 %vm293_vm0, %v2700_v7  ;;  %2092 = vmatprep.subr.bf16.mxu0 %v2091_v30 }
 0x21c   : > { %1998 = vmatprep.mubr.msk.f32.mxu1 %vm293_vm0, %v2694_v3  ;;  %2074 = vmatpush3.bf16.msra.mxu1 %v2071_v27 }
 0x21d   : > { %2084 = vmatprep.subr.bf16.mxu1 %v2083_v31 }
 0x221   : > { %2013 = vmatmul.mubr.msk.f32.vlgmr.msra.gmra.mrb[4].mxu0 %vm293_vm0, %v2696_v4 }
 0x222   : > { %2094 = vmatpush3.bf16.msra.mxu0 %v2091_v30  ;;  %2033 = vmatprep.mubr.msk.f32.mxu0 %vm293_vm0, %v2698_v6 }
 0x223   : > { %1999 = vmatmul.mubr.msk.f32.vlgmr.msra.gmra.mrb[4].mxu1 %vm293_vm0, %v2696_v4  ;;  %2096 = vmatprep.subr.bf16.mxu0 %v2095_v38 }
 0x224   : > { %2086 = vmatpush3.bf16.msra.mxu1 %v2083_v31  ;;  %2019 = vmatprep.mubr.msk.f32.mxu1 %vm293_vm0, %v2698_v6 }
 0x225   : > { %2034 = vmatmul.mubr.msk.f32.vlgmr.msra.gmra.mrb[6].mxu0 %vm293_vm0, %v2700_v7  ;;  %2088 = vmatprep.subr.bf16.mxu1 %v2087_v39 }
 0x226   : > { %2040 = vmatprep.mubr.msk.f32.mxu0 %vm293_vm0, %v2694_v3  ;;  %2098 = vmatpush3.bf16.msra.mxu0 %v2095_v38 }
 0x227   : > { %2020 = vmatmul.mubr.msk.f32.vlgmr.msra.gmra.mrb[6].mxu1 %vm293_vm0, %v2700_v7 }
 0x228   : > { %2026 = vmatprep.mubr.msk.f32.mxu1 %vm293_vm0, %v2694_v3  ;;  %2090 = vmatpush3.bf16.msra.mxu1 %v2087_v39 }
 0x22d   : > { %2041 = vmatmul.mubr.msk.f32.vlgmr.msra.gmra.mrb[6].mxu0 %vm293_vm0, %v2696_v4 }
 0x22f   : > { %2027 = vmatmul.mubr.msk.f32.vlgmr.msra.gmra.mrb[6].mxu1 %vm293_vm0, %v2696_v4 }
 0x2dc   : > { %v1958_v42 = vpop.f32.mrb[0].mxu0  ;;  %v1951_v44 = vpop.f32.mrb[0].mxu1 }
 0x2dd   : > { %v707_v46 = vpop.f32.mrb[1].mxu0  ;;  %v713_v47 = vadd.f32 %v1958_v42, %v1951_v44  ;;  %v626_v48 = vpop.f32.mrb[1].mxu1 }
 0x2de   : > { %v708_v50 = vadd.f32 %v707_v46, %v626_v48 }
 0x2df   : > { %v719_v51 = vadd.f32 %v717_v45, %v713_v47 }
 0x2e0   : > { %v718_v52 = vadd.f32 %v716_v49, %v708_v50 }
 0x2e1   : > { %721 = vst.msk [vmem:[#allocation2 + $0xe] sm:$0xff] %vm293_vm0, %v719_v51 }
 0x2e2   : > { %720 = vst.msk [vmem:[#allocation2 + $0x6] sm:$0xff] %vm293_vm0, %v718_v52 }
 0x2e8   : > { %v1986_v53 = vpop.f32.mrb[2].mxu0 }
 0x2e9   : > { %v1031_v54 = vpop.f32.mrb[3].mxu0  ;;  %v879_v55 = vld [vmem:[#allocation2 + $0xd] sm:$0xff]  ;;  %v878_v56 = vld [vmem:[#allocation2 + $0x5] sm:$0xff] }
 0x2ea   : > { %v1972_v57 = vpop.f32.mrb[2].mxu1 }
 0x2eb   : > { %v881_v58 = vadd.f32 %v1972_v57, %v879_v55  ;;  %v869_v59 = vpop.f32.mrb[3].mxu1 }
 0x2ec   : > { %v880_v60 = vadd.f32 %v878_v56, %v869_v59 }
 0x2ed   : > { %883 = vst.msk [vmem:[#allocation2 + $0xd] sm:$0xff] %vm293_vm0, %v881_v58 }
 0x2ee   : > { %882 = vst.msk [vmem:[#allocation2 + $0x5] sm:$0xff] %vm293_vm0, %v880_v60 }
 0x2f4   : > { %v2014_v61 = vpop.f32.mrb[4].mxu0 }
 0x2f5   : > { %v1355_v62 = vpop.f32.mrb[5].mxu0  ;;  %v1040_v63 = vld [vmem:[#allocation2 + $0x4] sm:$0xff]  ;;  %v1041_v3 = vld [vmem:[#allocation2 + $0xc] sm:$0xff] }
 0x2f6   : > { %v1042_v4 = vadd.f32 %v1040_v63, %v1031_v54  ;;  %v1043_v6 = vadd.f32 %v1986_v53, %v1041_v3  ;;  %v2000_v7 = vpop.f32.mrb[4].mxu1 }
 0x2f7   : > { %v1193_v8 = vpop.f32.mrb[5].mxu1 }
 0x2f8   : > { %1044 = vst.msk [vmem:[#allocation2 + $0x4] sm:$0xff] %vm293_vm0, %v1042_v4  ;;  %1045 = vst.msk [vmem:[#allocation2 + $0xc] sm:$0xff] %vm293_vm0, %v1043_v6 }
 0x2ff   : > { %v1203_v9 = vld [vmem:[#allocation2 + $0xb] sm:$0xff]  ;;  %v1202_v10 = vld [vmem:[#allocation2 + $0x3] sm:$0xff] }
 0x300   : > { %v1205_v11 = vadd.f32 %v2000_v7, %v1203_v9  ;;  %v1204_v14 = vadd.f32 %v1202_v10, %v1193_v8  ;;  %v2042_v15 = vpop.f32.mrb[6].mxu0 }
 0x301   : > { %v1679_v16 = vpop.f32.mrb[7].mxu0 }
 0x302   : > { %1207 = vst.msk [vmem:[#allocation2 + $0xb] sm:$0xff] %vm293_vm0, %v1205_v11  ;;  %1206 = vst.msk [vmem:[#allocation2 + $0x3] sm:$0xff] %vm293_vm0, %v1204_v14  ;;  %v2028_v17 = vpop.f32.mrb[6].mxu1 }
 0x303   : > { %v1517_v40 = vpop.f32.mrb[7].mxu1 }
 0x309   : > { %v1364_v43 = vld [vmem:[#allocation2 + $0x2] sm:$0xff]  ;;  %v1365_v21 = vld [vmem:[#allocation2 + $0xa] sm:$0xff] }
 0x30a   : > { %v1366_v22 = vadd.f32 %v1364_v43, %v1355_v62  ;;  %v1367_v24 = vadd.f32 %v2014_v61, %v1365_v21 }
 0x30c   : > { %1368 = vst.msk [vmem:[#allocation2 + $0x2] sm:$0xff] %vm293_vm0, %v1366_v22  ;;  %1369 = vst.msk [vmem:[#allocation2 + $0xa] sm:$0xff] %vm293_vm0, %v1367_v24 }
 0x313   : > { %v1527_v25 = vld [vmem:[#allocation2 + $0x9] sm:$0xff]  ;;  %v1526_v26 = vld [vmem:[#allocation2 + $0x1] sm:$0xff] }
 0x314   : > { %v1529_v27 = vadd.f32 %v2028_v17, %v1527_v25  ;;  %v1528_v28 = vadd.f32 %v1526_v26, %v1517_v40 }
 0x316   : > { %1531 = vst.msk [vmem:[#allocation2 + $0x9] sm:$0xff] %vm293_vm0, %v1529_v27  ;;  %1530 = vst.msk [vmem:[#allocation2 + $0x1] sm:$0xff] %vm293_vm0, %v1528_v28 }
 0x31d   : > { %v1688_v29 = vld [vmem:[#allocation2] sm:$0xff]  ;;  %v1689_v30 = vld [vmem:[#allocation2 + $0x8] sm:$0xff] }
 0x31e   : > { %v1690_v31 = vadd.f32 %v1688_v29, %v1679_v16  ;;  %v1691_v34 = vadd.f32 %v2042_v15, %v1689_v30 }
 0x320   : > { %1692 = vst.msk [vmem:[#allocation2] sm:$0xff] %vm293_vm0, %v1690_v31  ;;  %1693 = vst.msk [vmem:[#allocation2 + $0x8] sm:$0xff] %vm293_vm0, %v1691_v34 }
 0x327   : > { %v1694_v35 = vld [vmem:[#allocation2 + $0x3] sm:$0xff]  ;;  %v1695_v36 = vld [vmem:[#allocation2 + $0xb] sm:$0xff] }
 0x328   : > { %v1880_v37 = vmul.f32 -1.442695, %v1694_v35  ;;  %v1881_v38 = vmul.f32 -1.442695, %v1695_v36 }
 0x32a   : > { %2199 = vpow2.f32 %v1880_v37 }
 0x32b   : > { %2201 = vpow2.f32 %v1881_v38 }
 0x334   : > { %v2200_v39 = vpop.eup %2199 }
 0x335   : > { %v2202_v41 = vpop.eup %2201  ;;  %v1702_v42 = vadd.f32 1.0, %v2200_v39 }
 0x336   : > { %v1703_v44 = vadd.f32 1.0, %v2202_v41 }
 0x337   : > { %2203 = vrcp.f32 %v1702_v42 }
 0x338   : > { %2205 = vrcp.f32 %v1703_v44 }
 0x341   : > { %v2204_v45 = vpop.eup %2203 }
 0x342   : > { %v2206_v46 = vpop.eup %2205  ;;  %v1708_v47 = vmul.f32 %v2204_v45, %v2654_v20  ;;  %v1710_v48 = vmul.f32 %v2204_v45, %v2660_v23  ;;  %v1712_v49 = vmul.f32 %v2204_v45, %v2672_v32  ;;  %v1714_v50 = vmul.f32 %v2204_v45, %v2674_v33 }
 0x343   : > { %v1709_v51 = vmul.f32 %v2206_v46, %v2654_v20  ;;  %v1711_v52 = vmul.f32 %v2206_v46, %v2660_v23  ;;  %v1713_v53 = vmul.f32 %v2206_v46, %v2672_v32  ;;  %v1715_v54 = vmul.f32 %v2206_v46, %v2674_v33 }
 0x344   : > { %v1716_v55 = vadd.f32 1.0, %v1708_v47  ;;  %v1718_v56 = vadd.f32 1.0, %v1710_v48  ;;  %v1720_v57 = vadd.f32 1.0, %v1712_v49  ;;  %v1722_v58 = vadd.f32 1.0, %v1714_v50 }
 0x345   : > { %v1717_v59 = vadd.f32 1.0, %v1709_v51  ;;  %v1719_v60 = vadd.f32 1.0, %v1711_v52  ;;  %v1721_v61 = vadd.f32 1.0, %v1713_v53  ;;  %v1723_v62 = vadd.f32 1.0, %v1715_v54 }
 0x346   : > { %v1724_v20 = vmul.f32 %v1716_v55, %v2545_v1  ;;  %v1726_v23 = vmul.f32 %v1718_v56, %v2542_v0  ;;  %v1728_v32 = vmul.f32 %v1720_v57, %v2573_v13  ;;  %v1730_v33 = vmul.f32 %v1722_v58, %v2587_v19 }
 0x347   : > { %v1725_v63 = vmul.f32 %v1717_v59, %v2555_v5  ;;  %v1727_v1 = vmul.f32 %v1719_v60, %v2548_v2  ;;  %v1729_v0 = vmul.f32 %v1721_v61, %v2570_v12  ;;  %v1731_v13 = vmul.f32 %v1723_v62, %v2584_v18 }
 0x348   : > { %1732 = vst.msk [vmem:[%s284_s10] sm:$0xff] %vm293_vm0, %v1724_v20  ;;  %1734 = vst.msk [vmem:[%s284_s10 + $0x10] sm:$0xff] %vm293_vm0, %v1726_v23 }
 0x349   : > { %1736 = vst.msk [vmem:[%s284_s10 + $0x20] sm:$0xff] %vm293_vm0, %v1728_v32  ;;  %1738 = vst.msk [vmem:[%s284_s10 + $0x30] sm:$0xff] %vm293_vm0, %v1730_v33 }
 0x34a   : > { %1733 = vst.msk [vmem:[%s284_s10 + $0x8] sm:$0xff] %vm293_vm0, %v1725_v63  ;;  %1735 = vst.msk [vmem:[%s284_s10 + $0x18] sm:$0xff] %vm293_vm0, %v1727_v1 }
 0x34b   : > { %1737 = vst.msk [vmem:[%s284_s10 + $0x28] sm:$0xff] %vm293_vm0, %v1729_v0  ;;  %1739 = vst.msk [vmem:[%s284_s10 + $0x38] sm:$0xff] %vm293_vm0, %v1731_v13 }
 0x34c   : > { %2278 = shalt.err (!%p2275_p7)
}
 0x34d   : > { %s2279_s27 = scalar_lea.hbm %s2794_s8, 1024  ;;  %s2283_s26 = scalar_lea.hbm %s2858_s6, 2048 }
 0x34e   : > { %p2280_p9 = scmp.ne.s32.totalorder %s2794_s8, %s2279_s27  ;;  %p2284_p5 = scmp.lt.u32.totalorder %s2794_s8, %s2858_s6 }
 0x34f   : > { %p2285_p11 = scmp.lt.u32.totalorder %s2283_s26, %s2279_s27  ;;  %p2287_p4 = scmp.lt.u32.totalorder %s2279_s27, %s2794_s8 }
 0x350   : > { %p2281_p1 = pnand %p2280_p9, %p2474_p12 }
 0x351   : > { %p2286_p2 = por %p2285_p11, %p2284_p5 }
 0x352   : > { %p2282_p0 = pneg %p2281_p1 }
 0x353   : > { %p2288_p6 = por %p2287_p4, %p2286_p2 }
 0x355   : > { %p2289_p8 = pnand %p2288_p6, %p2282_p0 }
 0x357   : > { %2292 = shalt.err (!%p2289_p8)
}
 0x358   : > { %s2343_s25 = smov 128   ;;  %s2344_s17 = smov 8  }
 0x359   : > { %2127 = dma.vmem_to_hbm [thread:$0]  (%p2474_p12), %s2796_s30, 1024, %s2794_s8, %s1741_s15, %s2343_s25, %s2343_s25, %s2344_s17  }
 0x35a PF: > { %s1769_s16 = sand.u32 1, %s2323_s21   ;;  %p2873_p10 = scmp.ne.s32.totalorder %s2863_s28, 0 }
 0x35b   : > { %p2874_p13 = scmp.ge.s32.totalorder %s2335_s24, 2  ;;  %s1770_s18 = scalar_lea.sflag [#allocation5], %s1769_s16 }
 0x35d   : > { %p2138_p3 = pnand %p2874_p13, %p2873_p10 }
 0x35f   : > { %2318 = dma.done.wait (!%p2138_p3), %s1770_s18, 1024  }
 0x360   : > { %2320 = vsyncadd (!%p2138_p3), %s1770_s18, 4294966272  ;;  %p20_p7 = scmp.ge.s32.totalorder %s2436_s9, 4   ;;  %s2875_s21 = smov %s2327_s22 }
 0x361   : > { %s2876_s22 = smov %s2331_s23  ;;  %s2877_s23 = smov %s2470_s13 }
 0x362   : > { %s2878_s24 = smov %s2436_s9  ;;  %22 = sbr.rel (!%p20_p7) target bundleno = 6 (0x6), region = 106 }
 0x369   :  { %1775 = vsyncpa [#allocation4], 1 }
 0x36a   :  { %1777 = vsyncpa [#allocation4 + $0x1], 1 }
 0x36b   :  { %1778 = vsyncpa [#allocation7], 1 }
 0x36c   :  { %1779 = vsyncpa [#allocation5], 1 }
 0x36d   :  { %1781 = vsyncpa [#allocation5 + $0x1], 1 }

</bundles_post_ra>
